<compile_context>
chip_gen: v7x
topology: tpu7x:2x2x1
jax: 0.10.0
libtpu: 0.0.40
codegen_flags: <defaults>
</compile_context>

<pallas_src>
import functools

import jax
import jax.numpy as jnp
from jax.experimental import pallas as pl
from jax.experimental.pallas import tpu as pltpu


def _round_up(x, m):
    return ((x + m - 1) // m) * m


# --------------------------- per-generation tiles ---------------------------


def _tpu_tile_config():
    """Tile sizes / VMEM budget keyed on the TPU generation."""
    kind = ""
    try:
        kind = jax.devices()[0].device_kind.lower()
    except Exception:  # pragma: no cover - defensive
        pass
    if "v5 lite" in kind or "v5e" in kind or "v5lite" in kind:
        # v5e: 128 MiB VMEM, 128-wide MXU -> tn=128, big M/K tiles.
        return dict(tile_m=1024, tile_n=128, tile_k=2048,
                    vmem_limit=96 * 1024 * 1024)
    if "v6" in kind:
        # v6e: 128 MiB VMEM, 256-wide MXU -> tn=256, big M/K tiles.
        return dict(tile_m=1024, tile_n=256, tile_k=2048,
                    vmem_limit=96 * 1024 * 1024)
    # v7x (64 MiB VMEM per TensorCore) and unknown chips: conservative budget.
    # Working set at tm=1024, tk=1024, tn=256 (bf16, double-buffered) ~10 MiB.
    return dict(tile_m=1024, tile_n=256, tile_k=1024,
                vmem_limit=56 * 1024 * 1024)


def _choose_tk(K, tile_k):
    """K tile size.  The reduction axis must NEVER overhang (garbage along K
    would multiply into the accumulator), so tk == K or tk divides K."""
    if K <= tile_k:
        return K                      # single K step; full-dim block is legal
    best = 0
    tk = 128
    while tk <= tile_k:
        if K % tk == 0:
            best = tk
        tk += 128
    return best if best else K        # fallback: one big (correct) K tile


# ----------------------------- Pallas kernels ------------------------------


def _mm_bias_kernel(x_ref, w_ref, b_ref, o_ref, acc_ref, *, relu):
    """Tiled (tm,tk)@(tk,tn) with K reduction; epilogue = +bias [, ReLU]."""
    k = pl.program_id(2)

    @pl.when(k == 0)
    def _init():
        acc_ref[...] = jnp.zeros_like(acc_ref)

    acc_ref[...] += jnp.dot(x_ref[...], w_ref[...],
                            preferred_element_type=jnp.float32)

    @pl.when(k == pl.num_programs(2) - 1)
    def _finalize():
        y = acc_ref[...] + b_ref[...]
        if relu:
            y = jnp.maximum(y, 0.0)
        o_ref[...] = y.astype(o_ref.dtype)


def _mm_bias_res_kernel(x_ref, w_ref, b_ref, r_ref, o_ref, acc_ref, *, relu):
    """Same as above, plus a fused residual add (residual kept in its native
    dtype in HBM/VMEM and upcast to f32 only here)."""
    k = pl.program_id(2)

    @pl.when(k == 0)
    def _init():
        acc_ref[...] = jnp.zeros_like(acc_ref)

    acc_ref[...] += jnp.dot(x_ref[...], w_ref[...],
                            preferred_element_type=jnp.float32)

    @pl.when(k == pl.num_programs(2) - 1)
    def _finalize():
        y = acc_ref[...] + b_ref[...] + r_ref[...].astype(jnp.float32)
        if relu:
            y = jnp.maximum(y, 0.0)
        o_ref[...] = y.astype(o_ref.dtype)


def _mm_dual_kernel(x_ref, w1_ref, b1_ref, ws_ref, bs_ref,
                    o1_ref, os_ref, acc1_ref, accs_ref):
    """Fused conv1(+bn1+ReLU) and 1x1 projection shortcut(+bn): both matmuls
    share the same patches stream; ReLU applies to the first output only."""
    k = pl.program_id(2)

    @pl.when(k == 0)
    def _init():
        acc1_ref[...] = jnp.zeros_like(acc1_ref)
        accs_ref[...] = jnp.zeros_like(accs_ref)

    x = x_ref[...]
    acc1_ref[...] += jnp.dot(x, w1_ref[...], preferred_element_type=jnp.float32)
    accs_ref[...] += jnp.dot(x, ws_ref[...], preferred_element_type=jnp.float32)

    @pl.when(k == pl.num_programs(2) - 1)
    def _finalize():
        o1_ref[...] = jnp.maximum(acc1_ref[...] + b1_ref[...],
                                  0.0).astype(o1_ref.dtype)
        os_ref[...] = (accs_ref[...] + bs_ref[...]).astype(os_ref.dtype)


# ---------------------------- pallas_call wrappers ---------------------------


def _prep_weight(w_flat, scale, bias, np_pad, dtype):
    """Fold the BN scale into the (tiny) weight; pad Cout to a lane multiple."""
    cout = w_flat.shape[1]
    w = w_flat.astype(jnp.float32) * scale.astype(jnp.float32)[None, :]
    w = jnp.pad(w, ((0, 0), (0, np_pad - cout))).astype(dtype)
    b = jnp.pad(bias.astype(jnp.float32), ((0, np_pad - cout),)).reshape(1, np_pad)
    return w, b


def _tiles(M, K, np_pad, cfg):
    tm = min(cfg["tile_m"], _round_up(M, 16))   # 16: bf16 sublane packing
    tn = min(cfg["tile_n"], np_pad)
    tk = _choose_tk(K, cfg["tile_k"])
    grid = (pl.cdiv(M, tm), pl.cdiv(np_pad, tn), K // tk)
    return tm, tn, tk, grid


def conv_bn_act(patches, w_flat, scale, bias, residual=None, relu=False,
                out_dtype=None, cfg=None):
    """conv-as-matmul + folded BN + optional fused residual + optional ReLU.

    patches : (M, K) in the MXU compute dtype (bf16/f32); never copied/padded.
    w_flat  : (K, Cout) f32.  scale/bias: (Cout,) f32 (folded BatchNorm).
    residual: (M, >=Cout) in its native dtype, or None.
    Returns (M, Cout) in out_dtype.
    """
    cfg = cfg or _tpu_tile_config()
    out_dtype = out_dtype or patches.dtype
    M, K = patches.shape
    cout = w_flat.shape[1]
    np_pad = _round_up(cout, 128)               # lane-dense stores / MXU width

    w_p, b_p = _prep_weight(w_flat, scale, bias, np_pad, patches.dtype)
    tm, tn, tk, grid = _tiles(M, K, np_pad, cfg)

    in_specs = [
        pl.BlockSpec((tm, tk), lambda i, j, k: (i, k)),    # patches (no HBM copy)
        pl.BlockSpec((tk, tn), lambda i, j, k: (k, j)),    # scale-folded weights
        pl.BlockSpec((1, tn), lambda i, j, k: (0, j)),     # BN bias
    ]
    args = [patches, w_p, b_p]
    if residual is None:
        kernel = functools.partial(_mm_bias_kernel, relu=relu)
    else:
        in_specs.append(pl.BlockSpec((tm, tn), lambda i, j, k: (i, j)))
        args.append(residual)                              # native dtype, no copy
        kernel = functools.partial(_mm_bias_res_kernel, relu=relu)

    out = pl.pallas_call(
        kernel,
        out_shape=jax.ShapeDtypeStruct((M, np_pad), out_dtype),
        grid=grid,
        in_specs=in_specs,
        out_specs=pl.BlockSpec((tm, tn), lambda i, j, k: (i, j)),
        scratch_shapes=[pltpu.VMEM((tm, tn), jnp.float32)],
        compiler_params=pltpu.CompilerParams(
            dimension_semantics=("parallel", "parallel", "arbitrary"),
            vmem_limit_bytes=cfg["vmem_limit"],
        ),
    )(*args)
    return out[:, :cout]


def conv_bn_relu_with_projection(patches, w1_flat, scale1, bias1,
                                 wsc, scale_sc, bias_sc, center_row,
                                 out_dtype=None, cfg=None):
    """Fused conv1+bn1+ReLU and 1x1-projection-shortcut+bn.

    The 1x1 / stride-s shortcut reads exactly the centre tap of conv1's 3x3
    im2col patches, so its (Cin, Cout) weight is zero-embedded at rows
    [center_row, center_row+Cin) of a (K, Cout) matrix and both matmuls share
    one patch stream inside a single pallas_call.

    Returns (out1 (M, Cout), shortcut (M, Cout_pad)); the shortcut is left
    lane-padded (padding columns are exact zeros) so it can feed conv2's
    residual BlockSpec without another HBM copy.
    """
    cfg = cfg or _tpu_tile_config()
    out_dtype = out_dtype or patches.dtype
    M, K = patches.shape
    cout = w1_flat.shape[1]
    np_pad = _round_up(cout, 128)

    w1_p, b1_p = _prep_weight(w1_flat, scale1, bias1, np_pad, patches.dtype)
    cin = wsc.shape[0]
    wsc_embed = jnp.zeros((K, cout), jnp.float32).at[
        center_row:center_row + cin, :].set(wsc.astype(jnp.float32))
    ws_p, bs_p = _prep_weight(wsc_embed, scale_sc, bias_sc, np_pad, patches.dtype)

    tm, tn, tk, grid = _tiles(M, K, np_pad, cfg)
    out_spec = pl.BlockSpec((tm, tn), lambda i, j, k: (i, j))

    out1, sc = pl.pallas_call(
        _mm_dual_kernel,
        out_shape=(jax.ShapeDtypeStruct((M, np_pad), out_dtype),
                   jax.ShapeDtypeStruct((M, np_pad), out_dtype)),
        grid=grid,
        in_specs=[
            pl.BlockSpec((tm, tk), lambda i, j, k: (i, k)),   # shared patches
            pl.BlockSpec((tk, tn), lambda i, j, k: (k, j)),   # conv1 weights
            pl.BlockSpec((1, tn), lambda i, j, k: (0, j)),    # bn1 bias
            pl.BlockSpec((tk, tn), lambda i, j, k: (k, j)),   # shortcut weights
            pl.BlockSpec((1, tn), lambda i, j, k: (0, j)),    # shortcut bn bias
        ],
        out_specs=(out_spec, out_spec),
        scratch_shapes=[pltpu.VMEM((tm, tn), jnp.float32),
                        pltpu.VMEM((tm, tn), jnp.float32)],
        compiler_params=pltpu.CompilerParams(
            dimension_semantics=("parallel", "parallel", "arbitrary"),
            vmem_limit_bytes=cfg["vmem_limit"],
        ),
    )(patches, w1_p, b1_p, ws_p, bs_p)
    return out1[:, :cout], sc


# ------------------------------- glue (JAX) --------------------------------


def im2col(x_nhwc, ksize, stride, pad):
    """Extract conv patches. Returns ((N*Ho*Wo, k*k*C), (N, Ho, Wo))."""
    x_p = jnp.pad(x_nhwc, ((0, 0), (pad, pad), (pad, pad), (0, 0)))
    n, hp, wp, c = x_p.shape
    ho = (hp - ksize) // stride + 1
    wo = (wp - ksize) // stride + 1
    cols = []
    for kh in range(ksize):
        for kw in range(ksize):
            cols.append(
                x_p[:, kh:kh + ho * stride:stride, kw:kw + wo * stride:stride, :])
    patches = jnp.concatenate(cols, axis=-1)               # (N, Ho, Wo, k*k*C)
    return patches.reshape(n * ho * wo, ksize * ksize * c), (n, ho, wo)


def flatten_conv_weight(w_oihw):
    """PyTorch (Cout, Cin, kh, kw) -> (kh*kw*Cin, Cout), matching im2col order."""
    co, ci, kh, kw = w_oihw.shape
    return jnp.transpose(w_oihw, (2, 3, 1, 0)).reshape(kh * kw * ci, co)


def fold_bn(bn, eps=1e-5):
    scale = bn["gamma"] / jnp.sqrt(bn["var"] + eps)
    bias = bn["beta"] - bn["mean"] * scale
    return scale, bias


def _maybe_pad_channels(x_nhwc, w_oihw, cfg):
    """Zero-pad the input-channel axis only when K = 9*Cin must be split
    across the reduction grid (the K axis must never overhang)."""
    cin = x_nhwc.shape[-1]
    if 9 * cin <= cfg["tile_k"] or cin % 128 == 0:
        return x_nhwc, w_oihw, cin
    cin_p = _round_up(cin, 128)
    x_nhwc = jnp.pad(x_nhwc, ((0, 0), (0, 0), (0, 0), (0, cin_p - cin)))
    w_oihw = jnp.pad(w_oihw, ((0, 0), (0, cin_p - cin), (0, 0), (0, 0)))
    return x_nhwc, w_oihw, cin_p


def basic_block_forward(x_nchw, params, stride, compute_dtype=jnp.bfloat16):
    """relu(bn2(conv2(relu(bn1(conv1(x))))) + shortcut(x))  (inference mode)."""
    cfg = _tpu_tile_config()

    # NCHW -> NHWC; cast to the MXU dtype *before* the 9x im2col amplification.
    x = jnp.transpose(x_nchw, (0, 2, 3, 1)).astype(compute_dtype)
    n, h, w, cin = x.shape
    cout = params["conv1_w"].shape[0]

    s1, b1 = fold_bn(params["bn1"])
    s2, b2 = fold_bn(params["bn2"])

    # conv1 (3x3, stride) + bn1 + relu   [+ fused 1x1 projection shortcut]
    x1, conv1_w, cin_p = _maybe_pad_channels(x, params["conv1_w"], cfg)
    p1, (_, h1, w1) = im2col(x1, 3, stride, 1)              # (M1, 9*cin_p)

    if stride != 1 or cin != cout:
        ssc, bsc = fold_bn(params["sc_bn"])
        wsc = params["sc_conv_w"][:, :, 0, 0].T             # (cin, cout)
        out1, sc = conv_bn_relu_with_projection(
            p1, flatten_conv_weight(conv1_w), s1, b1,
            wsc, ssc, bsc, center_row=4 * cin_p,            # centre 3x3 tap
            out_dtype=compute_dtype, cfg=cfg)
    else:
        out1 = conv_bn_act(p1, flatten_conv_weight(conv1_w), s1, b1,
                           relu=True, out_dtype=compute_dtype, cfg=cfg)
        sc = x.reshape(n * h * w, cin)                      # identity shortcut

    # conv2 (3x3, stride 1) + bn2 + residual add + relu (fused epilogue)
    out1_nhwc = out1.reshape(n, h1, w1, cout)
    x2, conv2_w, _ = _maybe_pad_channels(out1_nhwc, params["conv2_w"], cfg)
    p2, _ = im2col(x2, 3, 1, 1)                             # (M1, 9*cout_p)
    out = conv_bn_act(p2, flatten_conv_weight(conv2_w), s2, b2,
                      residual=sc, relu=True, out_dtype=jnp.float32, cfg=cfg)
    out = out.reshape(n, h1, w1, cout)
    return jnp.transpose(out, (0, 3, 1, 2))                 # NHWC -> NCHW


# --------------------------- pure-JAX reference -----------------------------


def _ref_conv(x, w, stride, pad):
    return jax.lax.conv_general_dilated(
        x, w, (stride, stride), ((pad, pad), (pad, pad)),
        dimension_numbers=("NCHW", "OIHW", "NCHW"))


def _ref_bn(x, bn, eps=1e-5):
    s = (bn["gamma"] / jnp.sqrt(bn["var"] + eps))[None, :, None, None]
    b = (bn["beta"] - bn["mean"] * bn["gamma"] / jnp.sqrt(bn["var"] + eps))[None, :, None, None]
    return x * s + b


def basic_block_reference(x, params, stride):
    out = jax.nn.relu(_ref_bn(_ref_conv(x, params["conv1_w"], stride, 1), params["bn1"]))
    out = _ref_bn(_ref_conv(out, params["conv2_w"], 1, 1), params["bn2"])
    cin, cout = x.shape[1], params["conv1_w"].shape[0]
    if stride != 1 or cin != cout:
        sc = _ref_bn(_ref_conv(x, params["sc_conv_w"], stride, 0), params["sc_bn"])
    else:
        sc = x
    return jax.nn.relu(out + sc)


# --------------------------------- main -------------------------------------


def make_bn_params(key, c):
    k1, k2, k3, k4 = jax.random.split(key, 4)
    return {
        "gamma": 1.0 + 0.1 * jax.random.normal(k1, (c,), jnp.float32),
        "beta": 0.1 * jax.random.normal(k2, (c,), jnp.float32),
        "mean": 0.1 * jax.random.normal(k3, (c,), jnp.float32),
        "var": 1.0 + 0.5 * jax.random.uniform(k4, (c,), jnp.float32),
    }


def make_block_params(key, in_c, out_c, with_projection):
    keys = jax.random.split(key, 7)
    p = {
        "conv1_w": 0.1 * jax.random.normal(keys[0], (out_c, in_c, 3, 3), jnp.float32),
        "conv2_w": 0.1 * jax.random.normal(keys[1], (out_c, out_c, 3, 3), jnp.float32),
        "bn1": make_bn_params(keys[2], out_c),
        "bn2": make_bn_params(keys[3], out_c),
    }
    if with_projection:
        p["sc_conv_w"] = 0.1 * jax.random.normal(keys[4], (out_c, in_c, 1, 1), jnp.float32)
        p["sc_bn"] = make_bn_params(keys[5], out_c)
    return p


if __name__ == "__main__":
    key = jax.random.PRNGKey(0)
    fwd = jax.jit(basic_block_forward, static_argnums=(2, 3))

    # --- case 1: projection shortcut (stride 2, channel change) -------------
    in_c, out_c, stride = 4, 8, 2
    N, H, W = 2, 16, 16
    k_x, k_p, key = jax.random.split(key, 3)
    x = jax.random.normal(k_x, (N, in_c, H, W), jnp.float32)
    params = make_block_params(k_p, in_c, out_c, with_projection=True)
    ref = jax.block_until_ready(basic_block_reference(x, params, stride))

    out = jax.block_until_ready(fwd(x, params, stride, jnp.float32))
    assert out.shape == (N, out_c, H // stride, W // stride), out.shape
    assert jnp.allclose(out, ref, atol=1e-3, rtol=1e-3), float(jnp.abs(out - ref).max())

    # bf16 end-to-end (patches, weights, intermediate activation, residual in
    # bf16; f32 accumulation + epilogue) -> relaxed tolerance.
    out_bf16 = jax.block_until_ready(fwd(x, params, stride, jnp.bfloat16))
    assert out_bf16.dtype == jnp.float32
    assert jnp.allclose(out_bf16, ref, atol=1e-1, rtol=5e-2), \
        float(jnp.abs(out_bf16 - ref).max())

    # --- case 2: identity shortcut (stride 1, same channels) ----------------
    in_c2 = out_c2 = 8
    k_x2, k_p2, key = jax.random.split(key, 3)
    x2 = jax.random.normal(k_x2, (N, in_c2, H, W), jnp.float32)
    params2 = make_block_params(k_p2, in_c2, out_c2, with_projection=False)
    ref2 = jax.block_until_ready(basic_block_reference(x2, params2, 1))

    out2 = jax.block_until_ready(fwd(x2, params2, 1, jnp.float32))
    assert out2.shape == (N, out_c2, H, W), out2.shape
    assert jnp.allclose(out2, ref2, atol=1e-3, rtol=1e-3), \
        float(jnp.abs(out2 - ref2).max())

    out2_bf16 = jax.block_until_ready(fwd(x2, params2, 1, jnp.bfloat16))
    assert jnp.allclose(out2_bf16, ref2, atol=1e-1, rtol=5e-2), \
        float(jnp.abs(out2_bf16 - ref2).max())

    print("KERNEL_OK")
</pallas_src>

<mosaic_0001>
module attributes {stable_mosaic.version = 11 : i64} {
  func.func @_mm_dual_kernel(%arg0: i32, %arg1: i32, %arg2: i32, %arg3: memref<128x36xf32, #tpu.memory_space<vmem>>, %arg4: memref<36x128xf32, #tpu.memory_space<vmem>>, %arg5: memref<1x128xf32, #tpu.memory_space<vmem>>, %arg6: memref<36x128xf32, #tpu.memory_space<vmem>>, %arg7: memref<1x128xf32, #tpu.memory_space<vmem>>, %arg8: memref<128x128xf32, #tpu.memory_space<vmem>>, %arg9: memref<128x128xf32, #tpu.memory_space<vmem>>, %arg10: memref<128x128xf32, #tpu.memory_space<vmem>>, %arg11: memref<128x128xf32, #tpu.memory_space<vmem>>) attributes {dimension_semantics = [#tpu.dimension_semantics<parallel>, #tpu.dimension_semantics<parallel>, #tpu.dimension_semantics<arbitrary>], iteration_bounds = array<i64: 1, 1, 1>, scalar_prefetch = 0 : i64, scratch_operands = 2 : i64, tpu.core_type = #tpu.core_type<tc>, window_params = [{transform_indices = @transform_0, window_bounds = array<i64: 128, 36>}, {transform_indices = @transform_1, window_bounds = array<i64: 36, 128>}, {transform_indices = @transform_2, window_bounds = array<i64: 1, 128>}, {transform_indices = @transform_3, window_bounds = array<i64: 36, 128>}, {transform_indices = @transform_4, window_bounds = array<i64: 1, 128>}, {transform_indices = @transform_5, window_bounds = array<i64: 128, 128>}, {transform_indices = @transform_6, window_bounds = array<i64: 128, 128>}]} {
    %c0_i32 = arith.constant 0 : i32
    %0 = arith.cmpi eq, %arg2, %c0_i32 : i32
    %1 = arith.extui %0 : i1 to i32
    %c0_i32_0 = arith.constant 0 : i32
    %2 = arith.cmpi ne, %1, %c0_i32_0 : i32
    scf.if %2 {
      %cst_17 = arith.constant 0.000000e+00 : f32
      %17 = vector.broadcast %cst_17 : f32 to vector<128x128xf32>
      %c0_18 = arith.constant 0 : index
      %c0_19 = arith.constant 0 : index
      %18 = vector.load %arg10[%c0_18, %c0_19] : memref<128x128xf32, #tpu.memory_space<vmem>>, vector<128x128xf32>
      tpu.vector_store %arg10[%c0_18, %c0_19], %17 {strides = array<i32>} : memref<128x128xf32, #tpu.memory_space<vmem>>, vector<128x128xf32>,
      %cst_20 = arith.constant 0.000000e+00 : f32
      %19 = vector.broadcast %cst_20 : f32 to vector<128x128xf32>
      %c0_21 = arith.constant 0 : index
      %c0_22 = arith.constant 0 : index
      %20 = vector.load %arg11[%c0_21, %c0_22] : memref<128x128xf32, #tpu.memory_space<vmem>>, vector<128x128xf32>
      tpu.vector_store %arg11[%c0_21, %c0_22], %19 {strides = array<i32>} : memref<128x128xf32, #tpu.memory_space<vmem>>, vector<128x128xf32>,
    } else {
    }
    %c0 = arith.constant 0 : index
    %c0_1 = arith.constant 0 : index
    %3 = vector.load %arg3[%c0, %c0_1] : memref<128x36xf32, #tpu.memory_space<vmem>>, vector<128x36xf32>
    %c0_2 = arith.constant 0 : index
    %c0_3 = arith.constant 0 : index
    %4 = vector.load %arg10[%c0_2, %c0_3] : memref<128x128xf32, #tpu.memory_space<vmem>>, vector<128x128xf32>
    %c0_4 = arith.constant 0 : index
    %c0_5 = arith.constant 0 : index
    %5 = vector.load %arg4[%c0_4, %c0_5] : memref<36x128xf32, #tpu.memory_space<vmem>>, vector<36x128xf32>
    %cst = arith.constant dense<0.000000e+00> : vector<128x128xf32>
    %6 = tpu.matmul %3, %5, %cst {dimension_numbers = #tpu.dot_dimension_numbers<[1], [0], [0], [1], [0, 0, 1, 1], [], []>} : vector<128x36xf32>, vector<36x128xf32>, vector<128x128xf32> -> vector<128x128xf32>
    %7 = arith.addf %4, %6 : vector<128x128xf32>
    %c0_6 = arith.constant 0 : index
    %c0_7 = arith.constant 0 : index
    %8 = vector.load %arg10[%c0_6, %c0_7] : memref<128x128xf32, #tpu.memory_space<vmem>>, vector<128x128xf32>
    tpu.vector_store %arg10[%c0_6, %c0_7], %7 {strides = array<i32>} : memref<128x128xf32, #tpu.memory_space<vmem>>, vector<128x128xf32>,
    %c0_8 = arith.constant 0 : index
    %c0_9 = arith.constant 0 : index
    %9 = vector.load %arg11[%c0_8, %c0_9] : memref<128x128xf32, #tpu.memory_space<vmem>>, vector<128x128xf32>
    %c0_10 = arith.constant 0 : index
    %c0_11 = arith.constant 0 : index
    %10 = vector.load %arg6[%c0_10, %c0_11] : memref<36x128xf32, #tpu.memory_space<vmem>>, vector<36x128xf32>
    %cst_12 = arith.constant dense<0.000000e+00> : vector<128x128xf32>
    %11 = tpu.matmul %3, %10, %cst_12 {dimension_numbers = #tpu.dot_dimension_numbers<[1], [0], [0], [1], [0, 0, 1, 1], [], []>} : vector<128x36xf32>, vector<36x128xf32>, vector<128x128xf32> -> vector<128x128xf32>
    %12 = arith.addf %9, %11 : vector<128x128xf32>
    %c0_13 = arith.constant 0 : index
    %c0_14 = arith.constant 0 : index
    %13 = vector.load %arg11[%c0_13, %c0_14] : memref<128x128xf32, #tpu.memory_space<vmem>>, vector<128x128xf32>
    tpu.vector_store %arg11[%c0_13, %c0_14], %12 {strides = array<i32>} : memref<128x128xf32, #tpu.memory_space<vmem>>, vector<128x128xf32>,
    %c0_i32_15 = arith.constant 0 : i32
    %14 = arith.cmpi eq, %arg2, %c0_i32_15 : i32
    %15 = arith.extui %14 : i1 to i32
    %c0_i32_16 = arith.constant 0 : i32
    %16 = arith.cmpi ne, %15, %c0_i32_16 : i32
    scf.if %16 {
      %c0_17 = arith.constant 0 : index
      %c0_18 = arith.constant 0 : index
      %17 = vector.load %arg10[%c0_17, %c0_18] : memref<128x128xf32, #tpu.memory_space<vmem>>, vector<128x128xf32>
      %c0_19 = arith.constant 0 : index
      %c0_20 = arith.constant 0 : index
      %18 = vector.load %arg5[%c0_19, %c0_20] : memref<1x128xf32, #tpu.memory_space<vmem>>, vector<1x128xf32>
      %19 = vector.broadcast %18 : vector<1x128xf32> to vector<128x128xf32>
      %20 = arith.addf %17, %19 : vector<128x128xf32>
      %cst_21 = arith.constant 0.000000e+00 : f32
      %21 = vector.broadcast %cst_21 : f32 to vector<128x128xf32>
      %22 = arith.maximumf %20, %21 : vector<128x128xf32>
      %c0_22 = arith.constant 0 : index
      %c0_23 = arith.constant 0 : index
      %23 = vector.load %arg8[%c0_22, %c0_23] : memref<128x128xf32, #tpu.memory_space<vmem>>, vector<128x128xf32>
      tpu.vector_store %arg8[%c0_22, %c0_23], %22 {strides = array<i32>} : memref<128x128xf32, #tpu.memory_space<vmem>>, vector<128x128xf32>,
      %c0_24 = arith.constant 0 : index
      %c0_25 = arith.constant 0 : index
      %24 = vector.load %arg11[%c0_24, %c0_25] : memref<128x128xf32, #tpu.memory_space<vmem>>, vector<128x128xf32>
      %c0_26 = arith.constant 0 : index
      %c0_27 = arith.constant 0 : index
      %25 = vector.load %arg7[%c0_26, %c0_27] : memref<1x128xf32, #tpu.memory_space<vmem>>, vector<1x128xf32>
      %26 = vector.broadcast %25 : vector<1x128xf32> to vector<128x128xf32>
      %27 = arith.addf %24, %26 : vector<128x128xf32>
      %c0_28 = arith.constant 0 : index
      %c0_29 = arith.constant 0 : index
      %28 = vector.load %arg9[%c0_28, %c0_29] : memref<128x128xf32, #tpu.memory_space<vmem>>, vector<128x128xf32>
      tpu.vector_store %arg9[%c0_28, %c0_29], %27 {strides = array<i32>} : memref<128x128xf32, #tpu.memory_space<vmem>>, vector<128x128xf32>,
    } else {
    }
    return
  }
  func.func @transform_0(%arg0: i32, %arg1: i32, %arg2: i32) -> (i32, i32) {
    %c0_i32 = arith.constant 0 : i32
    return %arg0, %arg2 : i32, i32
  }
  func.func @transform_1(%arg0: i32, %arg1: i32, %arg2: i32) -> (i32, i32) {
    %c0_i32 = arith.constant 0 : i32
    return %arg2, %arg1 : i32, i32
  }
  func.func @transform_2(%arg0: i32, %arg1: i32, %arg2: i32) -> (i32, i32) {
    %c0_i32 = arith.constant 0 : i32
    %c0_i32_0 = arith.constant 0 : i32
    return %c0_i32, %arg1 : i32, i32
  }
  func.func @transform_3(%arg0: i32, %arg1: i32, %arg2: i32) -> (i32, i32) {
    %c0_i32 = arith.constant 0 : i32
    return %arg2, %arg1 : i32, i32
  }
  func.func @transform_4(%arg0: i32, %arg1: i32, %arg2: i32) -> (i32, i32) {
    %c0_i32 = arith.constant 0 : i32
    %c0_i32_0 = arith.constant 0 : i32
    return %c0_i32, %arg1 : i32, i32
  }
  func.func @transform_5(%arg0: i32, %arg1: i32, %arg2: i32) -> (i32, i32) {
    %c0_i32 = arith.constant 0 : i32
    return %arg0, %arg1 : i32, i32
  }
  func.func @transform_6(%arg0: i32, %arg1: i32, %arg2: i32) -> (i32, i32) {
    %c0_i32 = arith.constant 0 : i32
    return %arg0, %arg1 : i32, i32
  }
}

module attributes {stable_mosaic.version = 11 : i64} {
  func.func @_mm_bias_res_kernel(%arg0: i32, %arg1: i32, %arg2: i32, %arg3: memref<128x72xf32, #tpu.memory_space<vmem>>, %arg4: memref<72x128xf32, #tpu.memory_space<vmem>>, %arg5: memref<1x128xf32, #tpu.memory_space<vmem>>, %arg6: memref<128x128xf32, #tpu.memory_space<vmem>>, %arg7: memref<128x128xf32, #tpu.memory_space<vmem>>, %arg8: memref<128x128xf32, #tpu.memory_space<vmem>>) attributes {dimension_semantics = [#tpu.dimension_semantics<parallel>, #tpu.dimension_semantics<parallel>, #tpu.dimension_semantics<arbitrary>], iteration_bounds = array<i64: 1, 1, 1>, scalar_prefetch = 0 : i64, scratch_operands = 1 : i64, tpu.core_type = #tpu.core_type<tc>, window_params = [{transform_indices = @transform_0, window_bounds = array<i64: 128, 72>}, {transform_indices = @transform_1, window_bounds = array<i64: 72, 128>}, {transform_indices = @transform_2, window_bounds = array<i64: 1, 128>}, {transform_indices = @transform_3, window_bounds = array<i64: 128, 128>}, {transform_indices = @transform_4, window_bounds = array<i64: 128, 128>}]} {
    %c0_i32 = arith.constant 0 : i32
    %0 = arith.cmpi eq, %arg2, %c0_i32 : i32
    %1 = arith.extui %0 : i1 to i32
    %c0_i32_0 = arith.constant 0 : i32
    %2 = arith.cmpi ne, %1, %c0_i32_0 : i32
    scf.if %2 {
      %cst_10 = arith.constant 0.000000e+00 : f32
      %12 = vector.broadcast %cst_10 : f32 to vector<128x128xf32>
      %c0_11 = arith.constant 0 : index
      %c0_12 = arith.constant 0 : index
      %13 = vector.load %arg8[%c0_11, %c0_12] : memref<128x128xf32, #tpu.memory_space<vmem>>, vector<128x128xf32>
      tpu.vector_store %arg8[%c0_11, %c0_12], %12 {strides = array<i32>} : memref<128x128xf32, #tpu.memory_space<vmem>>, vector<128x128xf32>,
    } else {
    }
    %c0 = arith.constant 0 : index
    %c0_1 = arith.constant 0 : index
    %3 = vector.load %arg8[%c0, %c0_1] : memref<128x128xf32, #tpu.memory_space<vmem>>, vector<128x128xf32>
    %c0_2 = arith.constant 0 : index
    %c0_3 = arith.constant 0 : index
    %4 = vector.load %arg3[%c0_2, %c0_3] : memref<128x72xf32, #tpu.memory_space<vmem>>, vector<128x72xf32>
    %c0_4 = arith.constant 0 : index
    %c0_5 = arith.constant 0 : index
    %5 = vector.load %arg4[%c0_4, %c0_5] : memref<72x128xf32, #tpu.memory_space<vmem>>, vector<72x128xf32>
    %cst = arith.constant dense<0.000000e+00> : vector<128x128xf32>
    %6 = tpu.matmul %4, %5, %cst {dimension_numbers = #tpu.dot_dimension_numbers<[1], [0], [0], [1], [0, 0, 1, 1], [], []>} : vector<128x72xf32>, vector<72x128xf32>, vector<128x128xf32> -> vector<128x128xf32>
    %7 = arith.addf %3, %6 : vector<128x128xf32>
    %c0_6 = arith.constant 0 : index
    %c0_7 = arith.constant 0 : index
    %8 = vector.load %arg8[%c0_6, %c0_7] : memref<128x128xf32, #tpu.memory_space<vmem>>, vector<128x128xf32>
    tpu.vector_store %arg8[%c0_6, %c0_7], %7 {strides = array<i32>} : memref<128x128xf32, #tpu.memory_space<vmem>>, vector<128x128xf32>,
    %c0_i32_8 = arith.constant 0 : i32
    %9 = arith.cmpi eq, %arg2, %c0_i32_8 : i32
    %10 = arith.extui %9 : i1 to i32
    %c0_i32_9 = arith.constant 0 : i32
    %11 = arith.cmpi ne, %10, %c0_i32_9 : i32
    scf.if %11 {
      %c0_10 = arith.constant 0 : index
      %c0_11 = arith.constant 0 : index
      %12 = vector.load %arg8[%c0_10, %c0_11] : memref<128x128xf32, #tpu.memory_space<vmem>>, vector<128x128xf32>
      %c0_12 = arith.constant 0 : index
      %c0_13 = arith.constant 0 : index
      %13 = vector.load %arg5[%c0_12, %c0_13] : memref<1x128xf32, #tpu.memory_space<vmem>>, vector<1x128xf32>
      %14 = vector.broadcast %13 : vector<1x128xf32> to vector<128x128xf32>
      %15 = arith.addf %12, %14 : vector<128x128xf32>
      %c0_14 = arith.constant 0 : index
      %c0_15 = arith.constant 0 : index
      %16 = vector.load %arg6[%c0_14, %c0_15] : memref<128x128xf32, #tpu.memory_space<vmem>>, vector<128x128xf32>
      %17 = arith.addf %15, %16 : vector<128x128xf32>
      %cst_16 = arith.constant 0.000000e+00 : f32
      %18 = vector.broadcast %cst_16 : f32 to vector<128x128xf32>
      %19 = arith.maximumf %17, %18 : vector<128x128xf32>
      %c0_17 = arith.constant 0 : index
      %c0_18 = arith.constant 0 : index
      %20 = vector.load %arg7[%c0_17, %c0_18] : memref<128x128xf32, #tpu.memory_space<vmem>>, vector<128x128xf32>
      tpu.vector_store %arg7[%c0_17, %c0_18], %19 {strides = array<i32>} : memref<128x128xf32, #tpu.memory_space<vmem>>, vector<128x128xf32>,
    } else {
    }
    return
  }
  func.func @transform_0(%arg0: i32, %arg1: i32, %arg2: i32) -> (i32, i32) {
    %c0_i32 = arith.constant 0 : i32
    return %arg0, %arg2 : i32, i32
  }
  func.func @transform_1(%arg0: i32, %arg1: i32, %arg2: i32) -> (i32, i32) {
    %c0_i32 = arith.constant 0 : i32
    return %arg2, %arg1 : i32, i32
  }
  func.func @transform_2(%arg0: i32, %arg1: i32, %arg2: i32) -> (i32, i32) {
    %c0_i32 = arith.constant 0 : i32
    %c0_i32_0 = arith.constant 0 : i32
    return %c0_i32, %arg1 : i32, i32
  }
  func.func @transform_3(%arg0: i32, %arg1: i32, %arg2: i32) -> (i32, i32) {
    %c0_i32 = arith.constant 0 : i32
    return %arg0, %arg1 : i32, i32
  }
  func.func @transform_4(%arg0: i32, %arg1: i32, %arg2: i32) -> (i32, i32) {
    %c0_i32 = arith.constant 0 : i32
    return %arg0, %arg1 : i32, i32
  }
}

</mosaic_0001>

<bundles_post_ra>
// kernel: basic_block_forward.3
= control target key start
LH: loop header
LB: loop body
LE: loop exit
PB: predicated region body
PF: predicated region fallthrough
CT: control target
= control target key end

     0   :  { %vm78_vm0 = vcmask 588800   ;;  %s757_s1 = inlined_call_operand.vmem [shape: f32[72,128], index: 1, kind: input, shape index: {}]   ;;  %s758_s0 = inlined_call_operand.vmem [shape: f32[128,72], index: 0, kind: input, shape index: {}]   ;;  %s759_s2 = inlined_call_operand.vmem [shape: f32[1,128], index: 2, kind: input, shape index: {}]   ;;  %s760_s3 = inlined_call_operand.vmem [shape: f32[128,128], index: 3, kind: input, shape index: {}]   ;;  %s761_s4 = inlined_call_operand.vmem [shape: f32[128,128], index: 4, kind: output, shape index: {}]  }
   0x1   :  { %v69_v0 = vld [vmem:[%s757_s1] sm:$0xff]  ;;  %v70_v1 = vld [vmem:[%s757_s1 + $0x8] sm:$0xff]  ;;  %v71_v2 = vld [vmem:[%s757_s1 + $0x10] sm:$0xff] }
   0x2   :  { %v498_v3 = vpack.c.bf16 %v70_v1, %v69_v0  ;;  %v72_v4 = vld [vmem:[%s757_s1 + $0x18] sm:$0xff]  ;;  %v73_v6 = vld [vmem:[%s757_s1 + $0x20] sm:$0xff]  ;;  %v74_v7 = vld [vmem:[%s757_s1 + $0x28] sm:$0xff] }
   0x3   :  { %v502_v5 = vpack.c.bf16 %v72_v4, %v71_v2  ;;  %v53_v8 = vld [vmem:[%s758_s0] sm:$0xff]  ;;  %v506_v10 = vpack.c.bf16 %v74_v7, %v73_v6  ;;  %v75_v11 = vld [vmem:[%s757_s1 + $0x30] sm:$0xff]  ;;  %v76_v12 = vld [vmem:[%s757_s1 + $0x38] sm:$0xff] }
   0x4   :  { %499 = vmatprep.subr.bf16.mxu0 %v498_v3  ;;  %514 = vmatprep.subr.bf16.mxu1 %v498_v3  ;;  %v61_v9 = vld [vmem:[%s758_s0 + $0x40] sm:$0xff]  ;;  %v510_v13 = vpack.c.bf16 %v76_v12, %v75_v11  ;;  %v54_v15 = vld [vmem:[%s758_s0 + $0x8] sm:$0xff]  ;;  %v55_v17 = vld [vmem:[%s758_s0 + $0x10] sm:$0xff] }
   0x5   :  { %501 = vmatpush3.bf16.msra.mxu0 %v498_v3  ;;  %519 = vmatpush3.bf16.msra.mxu1 %v498_v3  ;;  %v77_v14 = vld [vmem:[%s757_s1 + $0x40] sm:$0xff]  ;;  %v62_v16 = vld [vmem:[%s758_s0 + $0x48] sm:$0xff]  ;;  %v63_v18 = vld [vmem:[%s758_s0 + $0x50] sm:$0xff] }
   0x6   :  { %503 = vmatprep.subr.bf16.mxu0 %v502_v5  ;;  %515 = vmatprep.subr.bf16.mxu1 %v502_v5  ;;  %v56_v19 = vld [vmem:[%s758_s0 + $0x18] sm:$0xff]  ;;  %v57_v21 = vld [vmem:[%s758_s0 + $0x20] sm:$0xff]  ;;  %v58_v23 = vld [vmem:[%s758_s0 + $0x28] sm:$0xff] }
   0x7   :  { %474 = vmatprep.mubr.msk.f32.mxu0 %vm78_vm0, %v53_v8  ;;  %486 = vmatprep.mubr.msk.f32.mxu1 %vm78_vm0, %v61_v9  ;;  %v64_v20 = vld [vmem:[%s758_s0 + $0x58] sm:$0xff]  ;;  %v65_v22 = vld [vmem:[%s758_s0 + $0x60] sm:$0xff]  ;;  %v66_v24 = vld [vmem:[%s758_s0 + $0x68] sm:$0xff] }
   0x8   :  { %v59_v25 = vld [vmem:[%s758_s0 + $0x30] sm:$0xff]  ;;  %v60_v27 = vld [vmem:[%s758_s0 + $0x38] sm:$0xff]  ;;  %v643_v29 = vld [vmem:[%s759_s2] ss:$0 sm:$0xff] }
   0x9   :  { %505 = vmatpush3.bf16.msra.mxu0 %v502_v5  ;;  %520 = vmatpush3.bf16.msra.mxu1 %v502_v5  ;;  %v67_v26 = vld [vmem:[%s758_s0 + $0x70] sm:$0xff]  ;;  %v68_v28 = vld [vmem:[%s758_s0 + $0x78] sm:$0xff]  ;;  %v347_v31 = vld [vmem:[%s760_s3 + $0x8] sm:$0xff] }
   0xa   :  { %507 = vmatprep.subr.bf16.mxu0 %v506_v10  ;;  %516 = vmatprep.subr.bf16.mxu1 %v506_v10  ;;  %v355_v33 = vld [vmem:[%s760_s3 + $0x48] sm:$0xff]  ;;  %v346_v37 = vld [vmem:[%s760_s3] sm:$0xff]  ;;  %v349_v47 = vld [vmem:[%s760_s3 + $0x18] sm:$0xff] }
   0xb   :  { %v354_v39 = vld [vmem:[%s760_s3 + $0x40] sm:$0xff]  ;;  %v357_v49 = vld [vmem:[%s760_s3 + $0x58] sm:$0xff]  ;;  %v348_v55 = vld [vmem:[%s760_s3 + $0x10] sm:$0xff] }
   0xc   :  { %v356_v57 = vld [vmem:[%s760_s3 + $0x50] sm:$0xff]  ;;  %v351_v3 = vld [vmem:[%s760_s3 + $0x28] sm:$0xff]  ;;  %v350_v11 = vld [vmem:[%s760_s3 + $0x20] sm:$0xff] }
   0xd   :  { %509 = vmatpush3.bf16.msra.mxu0 %v506_v10  ;;  %521 = vmatpush3.bf16.msra.mxu1 %v506_v10  ;;  %v359_v5 = vld [vmem:[%s760_s3 + $0x68] sm:$0xff] }
   0xe   :  { %511 = vmatprep.subr.bf16.mxu0 %v510_v13  ;;  %517 = vmatprep.subr.bf16.mxu1 %v510_v13 }
  0x11   :  { %513 = vmatpush3.bf16.msra.mxu0 %v510_v13  ;;  %522 = vmatpush3.bf16.msra.mxu1 %v510_v13  ;;  %v358_v13 = vld [vmem:[%s760_s3 + $0x60] sm:$0xff] }
  0x12   :  { %472 = vmatprep.subr.mxu0 %v77_v14  ;;  %518 = vmatprep.subr.mxu1 %v77_v14 }
  0x15   :  { %473 = vmatpush3.msra.mxu0 %v77_v14  ;;  %523 = vmatpush3.msra.mxu1 %v77_v14 }
  0x16   :  { %475 = vmatmul.mubr.msk.f32.vlgmr.msra.gmra.mrb[0].mxu0 %vm78_vm0, %v54_v15  ;;  %487 = vmatmul.mubr.msk.f32.vlgmr.msra.gmra.mrb[0].mxu1 %vm78_vm0, %v62_v16 }
  0x17   :  { %477 = vmatprep.mubr.msk.f32.mxu0 %vm78_vm0, %v55_v17  ;;  %489 = vmatprep.mubr.msk.f32.mxu1 %vm78_vm0, %v63_v18 }
  0x1a   :  { %478 = vmatmul.mubr.msk.f32.gmra.mrb[2].mxu0 %vm78_vm0, %v56_v19  ;;  %490 = vmatmul.mubr.msk.f32.gmra.mrb[2].mxu1 %vm78_vm0, %v64_v20 }
  0x1b   :  { %480 = vmatprep.mubr.msk.f32.mxu0 %vm78_vm0, %v57_v21  ;;  %492 = vmatprep.mubr.msk.f32.mxu1 %vm78_vm0, %v65_v22 }
  0x1e   :  { %481 = vmatmul.mubr.msk.f32.gmra.mrb[4].mxu0 %vm78_vm0, %v58_v23  ;;  %493 = vmatmul.mubr.msk.f32.gmra.mrb[4].mxu1 %vm78_vm0, %v66_v24  ;;  %v353_v23 = vld [vmem:[%s760_s3 + $0x38] sm:$0xff] }
  0x1f   :  { %483 = vmatprep.mubr.msk.f32.mxu0 %vm78_vm0, %v59_v25  ;;  %495 = vmatprep.mubr.msk.f32.mxu1 %vm78_vm0, %v67_v26  ;;  %v361_v25 = vld [vmem:[%s760_s3 + $0x78] sm:$0xff] }
  0x22   :  { %484 = vmatmul.mubr.msk.f32.gmra.mrb[6].mxu0 %vm78_vm0, %v60_v27  ;;  %496 = vmatmul.mubr.msk.f32.gmra.mrb[6].mxu1 %vm78_vm0, %v68_v28 }
  0xe9   :  { %v476_v30 = vpop.f32.mrb[0].mxu0  ;;  %v488_v32 = vpop.f32.mrb[0].mxu1 }
  0xea   :  { %v331_v34 = vadd.f32 %v476_v30, %v643_v29  ;;  %v339_v35 = vadd.f32 %v488_v32, %v643_v29  ;;  %v193_v36 = vpop.f32.mrb[1].mxu0  ;;  %v233_v38 = vpop.f32.mrb[1].mxu1  ;;  %v352_v32 = vld [vmem:[%s760_s3 + $0x30] sm:$0xff] }
  0xeb   :  { %v330_v40 = vadd.f32 %v643_v29, %v193_v36  ;;  %v338_v41 = vadd.f32 %v643_v29, %v233_v38 }
  0xec   :  { %v363_v42 = vadd.f32 %v347_v31, %v331_v34  ;;  %v371_v43 = vadd.f32 %v355_v33, %v339_v35  ;;  %v360_v34 = vld [vmem:[%s760_s3 + $0x70] sm:$0xff] }
  0xed   :  { %v362_v44 = vadd.f32 %v346_v37, %v330_v40  ;;  %v370_v45 = vadd.f32 %v354_v39, %v338_v41  ;;  %v479_v46 = vpop.f32.mrb[2].mxu0  ;;  %v491_v48 = vpop.f32.mrb[2].mxu1 }
  0xee   :  { %v379_v50 = vmax.f32 %v363_v42, 0.0  ;;  %v387_v51 = vmax.f32 %v371_v43, 0.0  ;;  %v333_v52 = vadd.f32 %v479_v46, %v643_v29  ;;  %v341_v53 = vadd.f32 %v491_v48, %v643_v29  ;;  %v203_v54 = vpop.f32.mrb[3].mxu0  ;;  %v243_v56 = vpop.f32.mrb[3].mxu1 }
  0xef   :  { %v378_v58 = vmax.f32 %v362_v44, 0.0  ;;  %v386_v59 = vmax.f32 %v370_v45, 0.0  ;;  %v332_v60 = vadd.f32 %v643_v29, %v203_v54  ;;  %v340_v61 = vadd.f32 %v643_v29, %v243_v56 }
  0xf0   :  { %395 = vst [vmem:[%s761_s4 + $0x8] sm:$0xff] %v379_v50  ;;  %403 = vst [vmem:[%s761_s4 + $0x48] sm:$0xff] %v387_v51  ;;  %v365_v62 = vadd.f32 %v349_v47, %v333_v52  ;;  %v373_v63 = vadd.f32 %v357_v49, %v341_v53 }
  0xf1   :  { %394 = vst [vmem:[%s761_s4] sm:$0xff] %v378_v58  ;;  %402 = vst [vmem:[%s761_s4 + $0x40] sm:$0xff] %v386_v59  ;;  %v364_v0 = vadd.f32 %v348_v55, %v332_v60  ;;  %v372_v1 = vadd.f32 %v356_v57, %v340_v61  ;;  %v482_v2 = vpop.f32.mrb[4].mxu0  ;;  %v494_v4 = vpop.f32.mrb[4].mxu1 }
  0xf2   :  { %v381_v6 = vmax.f32 %v365_v62, 0.0  ;;  %v389_v7 = vmax.f32 %v373_v63, 0.0  ;;  %v335_v8 = vadd.f32 %v482_v2, %v643_v29  ;;  %v343_v9 = vadd.f32 %v494_v4, %v643_v29  ;;  %v213_v10 = vpop.f32.mrb[5].mxu0  ;;  %v253_v12 = vpop.f32.mrb[5].mxu1 }
  0xf3   :  { %v380_v14 = vmax.f32 %v364_v0, 0.0  ;;  %v388_v15 = vmax.f32 %v372_v1, 0.0  ;;  %v334_v16 = vadd.f32 %v643_v29, %v213_v10  ;;  %v342_v17 = vadd.f32 %v643_v29, %v253_v12 }
  0xf4   :  { %397 = vst [vmem:[%s761_s4 + $0x18] sm:$0xff] %v381_v6  ;;  %405 = vst [vmem:[%s761_s4 + $0x58] sm:$0xff] %v389_v7  ;;  %v367_v18 = vadd.f32 %v351_v3, %v335_v8  ;;  %v375_v19 = vadd.f32 %v359_v5, %v343_v9 }
  0xf5   :  { %396 = vst [vmem:[%s761_s4 + $0x10] sm:$0xff] %v380_v14  ;;  %404 = vst [vmem:[%s761_s4 + $0x50] sm:$0xff] %v388_v15  ;;  %v366_v20 = vadd.f32 %v350_v11, %v334_v16  ;;  %v374_v21 = vadd.f32 %v358_v13, %v342_v17  ;;  %v485_v22 = vpop.f32.mrb[6].mxu0  ;;  %v497_v24 = vpop.f32.mrb[6].mxu1 }
  0xf6   :  { %v383_v26 = vmax.f32 %v367_v18, 0.0  ;;  %v391_v27 = vmax.f32 %v375_v19, 0.0  ;;  %v337_v28 = vadd.f32 %v485_v22, %v643_v29  ;;  %v345_v30 = vadd.f32 %v497_v24, %v643_v29  ;;  %v223_v31 = vpop.f32.mrb[7].mxu0  ;;  %v263_v33 = vpop.f32.mrb[7].mxu1 }
  0xf7   :  { %v382_v35 = vmax.f32 %v366_v20, 0.0  ;;  %v390_v36 = vmax.f32 %v374_v21, 0.0  ;;  %v336_v37 = vadd.f32 %v643_v29, %v223_v31  ;;  %v344_v38 = vadd.f32 %v643_v29, %v263_v33 }
  0xf8   :  { %399 = vst [vmem:[%s761_s4 + $0x28] sm:$0xff] %v383_v26  ;;  %407 = vst [vmem:[%s761_s4 + $0x68] sm:$0xff] %v391_v27  ;;  %v369_v39 = vadd.f32 %v353_v23, %v337_v28  ;;  %v377_v40 = vadd.f32 %v361_v25, %v345_v30 }
  0xf9   :  { %398 = vst [vmem:[%s761_s4 + $0x20] sm:$0xff] %v382_v35  ;;  %406 = vst [vmem:[%s761_s4 + $0x60] sm:$0xff] %v390_v36  ;;  %v368_v41 = vadd.f32 %v352_v32, %v336_v37  ;;  %v376_v29 = vadd.f32 %v360_v34, %v344_v38 }
  0xfa   :  { %v385_v42 = vmax.f32 %v369_v39, 0.0  ;;  %v393_v43 = vmax.f32 %v377_v40, 0.0 }
  0xfb   :  { %v384_v44 = vmax.f32 %v368_v41, 0.0  ;;  %v392_v45 = vmax.f32 %v376_v29, 0.0 }
  0xfc   :  { %401 = vst [vmem:[%s761_s4 + $0x38] sm:$0xff] %v385_v42  ;;  %409 = vst [vmem:[%s761_s4 + $0x78] sm:$0xff] %v393_v43 }
  0xfd   :  { %400 = vst [vmem:[%s761_s4 + $0x30] sm:$0xff] %v384_v44  ;;  %408 = vst [vmem:[%s761_s4 + $0x70] sm:$0xff] %v392_v45 }

// kernel: basic_block_forward.2
= control target key start
LH: loop header
LB: loop body
LE: loop exit
PB: predicated region body
PF: predicated region fallthrough
CT: control target
= control target key end

     0   :  { %vm95_vm0 = vcmask 293888   ;;  %vm144_vm1 = vcmask 1043456   ;;  %s1108_s1 = inlined_call_operand.vmem [shape: f32[36,128], index: 1, kind: input, shape index: {}]   ;;  %s1109_s3 = inlined_call_operand.vmem [shape: f32[36,128], index: 3, kind: input, shape index: {}]   ;;  %s1110_s0 = inlined_call_operand.vmem [shape: f32[128,36], index: 0, kind: input, shape index: {}]   ;;  %s1111_s2 = inlined_call_operand.vmem [shape: f32[1,128], index: 2, kind: input, shape index: {}]   ;;  %s1112_s4 = inlined_call_operand.vmem [shape: f32[1,128], index: 4, kind: input, shape index: {}]   ;;  %s1113_s6 = inlined_call_operand.vmem [shape: f32[128,128], index: 6, kind: output, shape index: {1}]   ;;  %s1114_s5 = inlined_call_operand.vmem [shape: f32[128,128], index: 5, kind: output, shape index: {0}]  }
   0x1   :  { %v90_v0 = vld [vmem:[%s1108_s1] sm:$0xff]  ;;  %v91_v1 = vld [vmem:[%s1108_s1 + $0x8] sm:$0xff]  ;;  %v92_v5 = vld [vmem:[%s1108_s1 + $0x10] sm:$0xff] }
   0x2   :  { %v341_v2 = vld [vmem:[%s1109_s3] sm:$0xff]  ;;  %v809_v3 = vpack.c.bf16 %v91_v1, %v90_v0  ;;  %v342_v4 = vld [vmem:[%s1109_s3 + $0x8] sm:$0xff]  ;;  %v93_v6 = vld [vmem:[%s1108_s1 + $0x18] sm:$0xff] }
   0x3   :  { %v817_v7 = vpack.c.bf16 %v342_v4, %v341_v2  ;;  %v813_v8 = vpack.c.bf16 %v93_v6, %v92_v5  ;;  %v343_v9 = vld [vmem:[%s1109_s3 + $0x10] sm:$0xff]  ;;  %v344_v10 = vld [vmem:[%s1109_s3 + $0x18] sm:$0xff]  ;;  %v58_v12 = vld [vmem:[%s1110_s0] sm:$0xff] }
   0x4   :  { %810 = vmatprep.subr.bf16.mxu0 %v809_v3  ;;  %v821_v11 = vpack.c.bf16 %v344_v10, %v343_v9  ;;  %v94_v13 = vld [vmem:[%s1108_s1 + $0x20] sm:$0xf]  ;;  %751 = vmatprep.mubr.msk.f32.mxu0 %vm95_vm0, %v58_v12  ;;  %v59_v15 = vld [vmem:[%s1110_s0 + $0x8] sm:$0xff]  ;;  %v60_v16 = vld [vmem:[%s1110_s0 + $0x10] sm:$0xff] }
   0x5   :  { %812 = vmatpush3.bf16.msra.mxu0 %v809_v3  ;;  %818 = vmatprep.subr.bf16.mxu1 %v817_v7  ;;  %v345_v14 = vld [vmem:[%s1109_s3 + $0x20] sm:$0xf]  ;;  %v61_v17 = vld [vmem:[%s1110_s0 + $0x18] sm:$0xff]  ;;  %v63_v19 = vld [vmem:[%s1110_s0 + $0x28] sm:$0xff] }
   0x6   :  { %820 = vmatpush3.bf16.msra.mxu1 %v817_v7  ;;  %814 = vmatprep.subr.bf16.mxu0 %v813_v8  ;;  %v62_v18 = vld [vmem:[%s1110_s0 + $0x20] sm:$0xff]  ;;  %v64_v20 = vld [vmem:[%s1110_s0 + $0x30] sm:$0xff]  ;;  %v65_v21 = vld [vmem:[%s1110_s0 + $0x38] sm:$0xff] }
   0x7   :  { %822 = vmatprep.subr.bf16.mxu1 %v821_v11  ;;  %785 = vmatprep.mubr.msk.f32.mxu1 %vm95_vm0, %v58_v12  ;;  %v66_v22 = vld [vmem:[%s1110_s0 + $0x40] sm:$0xff]  ;;  %v67_v23 = vld [vmem:[%s1110_s0 + $0x48] sm:$0xff]  ;;  %v68_v24 = vld [vmem:[%s1110_s0 + $0x50] sm:$0xff] }
   0x8   :  { %v69_v25 = vld [vmem:[%s1110_s0 + $0x58] sm:$0xff]  ;;  %v70_v26 = vld [vmem:[%s1110_s0 + $0x60] sm:$0xff]  ;;  %v71_v27 = vld [vmem:[%s1110_s0 + $0x68] sm:$0xff] }
   0x9   :  { %816 = vmatpush3.bf16.msra.mxu0 %v813_v8  ;;  %v72_v28 = vld [vmem:[%s1110_s0 + $0x70] sm:$0xff]  ;;  %v73_v29 = vld [vmem:[%s1110_s0 + $0x78] sm:$0xff]  ;;  %v973_v30 = vld [vmem:[%s1111_s2] ss:$0 sm:$0xff] }
   0xa   :  { %824 = vmatpush3.bf16.msra.mxu1 %v821_v11  ;;  %749 = vmatprep.subr.msk.mxu0 %vm144_vm1, %v94_v13  ;;  %v978_v31 = vld [vmem:[%s1112_s4] ss:$0 sm:$0xff] }
   0xb   :  { %783 = vmatprep.subr.msk.mxu1 %vm144_vm1, %v345_v14 }
   0xd   :  { %750 = vmatpush3.msk.msra.mxu0 %vm144_vm1, %v94_v13 }
   0xe   :  { %752 = vmatmul.mubr.msk.f32.vlgmr.msra.gmra.mrb[0].mxu0 %vm95_vm0, %v59_v15  ;;  %784 = vmatpush3.msk.msra.mxu1 %vm144_vm1, %v345_v14 }
   0xf   :  { %786 = vmatmul.mubr.msk.f32.vlgmr.msra.gmra.mrb[0].mxu1 %vm95_vm0, %v59_v15  ;;  %754 = vmatprep.mubr.msk.f32.mxu0 %vm95_vm0, %v60_v16 }
  0x10   :  { %788 = vmatprep.mubr.msk.f32.mxu1 %vm95_vm0, %v60_v16 }
  0x12   :  { %755 = vmatmul.mubr.msk.f32.gmra.mrb[2].mxu0 %vm95_vm0, %v61_v17 }
  0x13   :  { %789 = vmatmul.mubr.msk.f32.gmra.mrb[2].mxu1 %vm95_vm0, %v61_v17  ;;  %757 = vmatprep.mubr.msk.f32.mxu0 %vm95_vm0, %v62_v18 }
  0x14   :  { %791 = vmatprep.mubr.msk.f32.mxu1 %vm95_vm0, %v62_v18 }
  0x16   :  { %758 = vmatmul.mubr.msk.f32.gmra.mrb[4].mxu0 %vm95_vm0, %v63_v19 }
  0x17   :  { %792 = vmatmul.mubr.msk.f32.gmra.mrb[4].mxu1 %vm95_vm0, %v63_v19  ;;  %760 = vmatprep.mubr.msk.f32.mxu0 %vm95_vm0, %v64_v20 }
  0x18   :  { %794 = vmatprep.mubr.msk.f32.mxu1 %vm95_vm0, %v64_v20 }
  0x1a   :  { %761 = vmatmul.mubr.msk.f32.gmra.mrb[6].mxu0 %vm95_vm0, %v65_v21 }
  0x1b   :  { %795 = vmatmul.mubr.msk.f32.gmra.mrb[6].mxu1 %vm95_vm0, %v65_v21  ;;  %763 = vmatprep.mubr.msk.f32.mxu0 %vm95_vm0, %v66_v22 }
  0x1c   :  { %797 = vmatprep.mubr.msk.f32.mxu1 %vm95_vm0, %v66_v22 }
  0x1e   :  { %764 = vmatmul.mubr.msk.f32.gmra.mrb[8].mxu0 %vm95_vm0, %v67_v23 }
  0x1f   :  { %798 = vmatmul.mubr.msk.f32.gmra.mrb[8].mxu1 %vm95_vm0, %v67_v23  ;;  %766 = vmatprep.mubr.msk.f32.mxu0 %vm95_vm0, %v68_v24 }
  0x20   :  { %800 = vmatprep.mubr.msk.f32.mxu1 %vm95_vm0, %v68_v24 }
  0x22   :  { %767 = vmatmul.mubr.msk.f32.gmra.mrb[10].mxu0 %vm95_vm0, %v69_v25 }
  0x23   :  { %801 = vmatmul.mubr.msk.f32.gmra.mrb[10].mxu1 %vm95_vm0, %v69_v25  ;;  %769 = vmatprep.mubr.msk.f32.mxu0 %vm95_vm0, %v70_v26 }
  0x24   :  { %803 = vmatprep.mubr.msk.f32.mxu1 %vm95_vm0, %v70_v26 }
  0x26   :  { %770 = vmatmul.mubr.msk.f32.gmra.mrb[12].mxu0 %vm95_vm0, %v71_v27 }
  0x27   :  { %804 = vmatmul.mubr.msk.f32.gmra.mrb[12].mxu1 %vm95_vm0, %v71_v27  ;;  %772 = vmatprep.mubr.msk.f32.mxu0 %vm95_vm0, %v72_v28 }
  0x28   :  { %806 = vmatprep.mubr.msk.f32.mxu1 %vm95_vm0, %v72_v28 }
  0x2a   :  { %773 = vmatmul.mubr.msk.f32.gmra.mrb[14].mxu0 %vm95_vm0, %v73_v29 }
  0x2b   :  { %807 = vmatmul.mubr.msk.f32.gmra.mrb[14].mxu1 %vm95_vm0, %v73_v29 }
  0xe1   :  { %v753_v32 = vpop.f32.mrb[0].mxu0 }
  0xe2   :  { %v553_v33 = vadd.f32 %v753_v32, %v973_v30  ;;  %v214_v34 = vpop.f32.mrb[1].mxu0  ;;  %v787_v35 = vpop.f32.mrb[0].mxu1 }
  0xe3   :  { %v552_v36 = vadd.f32 %v973_v30, %v214_v34  ;;  %v624_v37 = vadd.f32 %v787_v35, %v978_v31  ;;  %v415_v38 = vpop.f32.mrb[1].mxu1 }
  0xe4   :  { %v569_v39 = vmax.f32 %v553_v33, 0.0  ;;  %v623_v40 = vadd.f32 %v978_v31, %v415_v38 }
  0xe5   :  { %v568_v41 = vmax.f32 %v552_v36, 0.0  ;;  %640 = vst [vmem:[%s1113_s6 + $0x8] sm:$0xff] %v624_v37  ;;  %v756_v42 = vpop.f32.mrb[2].mxu0 }
  0xe6   :  { %585 = vst [vmem:[%s1114_s5 + $0x8] sm:$0xff] %v569_v39  ;;  %639 = vst [vmem:[%s1113_s6] sm:$0xff] %v623_v40  ;;  %v555_v43 = vadd.f32 %v756_v42, %v973_v30  ;;  %v224_v44 = vpop.f32.mrb[3].mxu0  ;;  %v790_v45 = vpop.f32.mrb[2].mxu1 }
  0xe7   :  { %584 = vst [vmem:[%s1114_s5] sm:$0xff] %v568_v41  ;;  %v554_v46 = vadd.f32 %v973_v30, %v224_v44  ;;  %v626_v47 = vadd.f32 %v790_v45, %v978_v31  ;;  %v425_v48 = vpop.f32.mrb[3].mxu1 }
  0xe8   :  { %v571_v49 = vmax.f32 %v555_v43, 0.0  ;;  %v625_v50 = vadd.f32 %v978_v31, %v425_v48 }
  0xe9   :  { %v570_v51 = vmax.f32 %v554_v46, 0.0  ;;  %642 = vst [vmem:[%s1113_s6 + $0x18] sm:$0xff] %v626_v47  ;;  %v759_v52 = vpop.f32.mrb[4].mxu0 }
  0xea   :  { %587 = vst [vmem:[%s1114_s5 + $0x18] sm:$0xff] %v571_v49  ;;  %641 = vst [vmem:[%s1113_s6 + $0x10] sm:$0xff] %v625_v50  ;;  %v557_v53 = vadd.f32 %v759_v52, %v973_v30  ;;  %v234_v54 = vpop.f32.mrb[5].mxu0  ;;  %v793_v55 = vpop.f32.mrb[4].mxu1 }
  0xeb   :  { %586 = vst [vmem:[%s1114_s5 + $0x10] sm:$0xff] %v570_v51  ;;  %v556_v56 = vadd.f32 %v973_v30, %v234_v54  ;;  %v628_v57 = vadd.f32 %v793_v55, %v978_v31  ;;  %v435_v58 = vpop.f32.mrb[5].mxu1 }
  0xec   :  { %v573_v59 = vmax.f32 %v557_v53, 0.0  ;;  %v627_v60 = vadd.f32 %v978_v31, %v435_v58 }
  0xed   :  { %v572_v61 = vmax.f32 %v556_v56, 0.0  ;;  %644 = vst [vmem:[%s1113_s6 + $0x28] sm:$0xff] %v628_v57  ;;  %v762_v62 = vpop.f32.mrb[6].mxu0 }
  0xee   :  { %589 = vst [vmem:[%s1114_s5 + $0x28] sm:$0xff] %v573_v59  ;;  %643 = vst [vmem:[%s1113_s6 + $0x20] sm:$0xff] %v627_v60  ;;  %v559_v63 = vadd.f32 %v762_v62, %v973_v30  ;;  %v244_v0 = vpop.f32.mrb[7].mxu0  ;;  %v796_v1 = vpop.f32.mrb[6].mxu1 }
  0xef   :  { %588 = vst [vmem:[%s1114_s5 + $0x20] sm:$0xff] %v572_v61  ;;  %v558_v2 = vadd.f32 %v973_v30, %v244_v0  ;;  %v630_v3 = vadd.f32 %v796_v1, %v978_v31  ;;  %v445_v4 = vpop.f32.mrb[7].mxu1 }
  0xf0   :  { %v575_v5 = vmax.f32 %v559_v63, 0.0  ;;  %v629_v6 = vadd.f32 %v978_v31, %v445_v4 }
  0xf1   :  { %v574_v7 = vmax.f32 %v558_v2, 0.0  ;;  %646 = vst [vmem:[%s1113_s6 + $0x38] sm:$0xff] %v630_v3  ;;  %v765_v8 = vpop.f32.mrb[8].mxu0 }
  0xf2   :  { %591 = vst [vmem:[%s1114_s5 + $0x38] sm:$0xff] %v575_v5  ;;  %645 = vst [vmem:[%s1113_s6 + $0x30] sm:$0xff] %v629_v6  ;;  %v561_v9 = vadd.f32 %v765_v8, %v973_v30  ;;  %v254_v10 = vpop.f32.mrb[9].mxu0  ;;  %v799_v11 = vpop.f32.mrb[8].mxu1 }
  0xf3   :  { %590 = vst [vmem:[%s1114_s5 + $0x30] sm:$0xff] %v574_v7  ;;  %v560_v12 = vadd.f32 %v973_v30, %v254_v10  ;;  %v632_v13 = vadd.f32 %v799_v11, %v978_v31  ;;  %v455_v14 = vpop.f32.mrb[9].mxu1 }
  0xf4   :  { %v577_v15 = vmax.f32 %v561_v9, 0.0  ;;  %v631_v16 = vadd.f32 %v978_v31, %v455_v14 }
  0xf5   :  { %v576_v17 = vmax.f32 %v560_v12, 0.0  ;;  %648 = vst [vmem:[%s1113_s6 + $0x48] sm:$0xff] %v632_v13  ;;  %v768_v18 = vpop.f32.mrb[10].mxu0 }
  0xf6   :  { %593 = vst [vmem:[%s1114_s5 + $0x48] sm:$0xff] %v577_v15  ;;  %647 = vst [vmem:[%s1113_s6 + $0x40] sm:$0xff] %v631_v16  ;;  %v563_v19 = vadd.f32 %v768_v18, %v973_v30  ;;  %v264_v20 = vpop.f32.mrb[11].mxu0  ;;  %v802_v21 = vpop.f32.mrb[10].mxu1 }
  0xf7   :  { %592 = vst [vmem:[%s1114_s5 + $0x40] sm:$0xff] %v576_v17  ;;  %v562_v22 = vadd.f32 %v973_v30, %v264_v20  ;;  %v634_v23 = vadd.f32 %v802_v21, %v978_v31  ;;  %v465_v24 = vpop.f32.mrb[11].mxu1 }
  0xf8   :  { %v579_v25 = vmax.f32 %v563_v19, 0.0  ;;  %v633_v26 = vadd.f32 %v978_v31, %v465_v24 }
  0xf9   :  { %v578_v27 = vmax.f32 %v562_v22, 0.0  ;;  %650 = vst [vmem:[%s1113_s6 + $0x58] sm:$0xff] %v634_v23  ;;  %v771_v28 = vpop.f32.mrb[12].mxu0 }
  0xfa   :  { %595 = vst [vmem:[%s1114_s5 + $0x58] sm:$0xff] %v579_v25  ;;  %649 = vst [vmem:[%s1113_s6 + $0x50] sm:$0xff] %v633_v26  ;;  %v565_v29 = vadd.f32 %v771_v28, %v973_v30  ;;  %v274_v32 = vpop.f32.mrb[13].mxu0  ;;  %v805_v33 = vpop.f32.mrb[12].mxu1 }
  0xfb   :  { %594 = vst [vmem:[%s1114_s5 + $0x50] sm:$0xff] %v578_v27  ;;  %v564_v34 = vadd.f32 %v973_v30, %v274_v32  ;;  %v636_v35 = vadd.f32 %v805_v33, %v978_v31  ;;  %v475_v36 = vpop.f32.mrb[13].mxu1 }
  0xfc   :  { %v581_v37 = vmax.f32 %v565_v29, 0.0  ;;  %v635_v38 = vadd.f32 %v978_v31, %v475_v36 }
  0xfd   :  { %v580_v39 = vmax.f32 %v564_v34, 0.0  ;;  %652 = vst [vmem:[%s1113_s6 + $0x68] sm:$0xff] %v636_v35  ;;  %v774_v40 = vpop.f32.mrb[14].mxu0 }
  0xfe   :  { %597 = vst [vmem:[%s1114_s5 + $0x68] sm:$0xff] %v581_v37  ;;  %651 = vst [vmem:[%s1113_s6 + $0x60] sm:$0xff] %v635_v38  ;;  %v567_v41 = vadd.f32 %v774_v40, %v973_v30  ;;  %v284_v42 = vpop.f32.mrb[15].mxu0  ;;  %v808_v43 = vpop.f32.mrb[14].mxu1 }
  0xff   :  { %596 = vst [vmem:[%s1114_s5 + $0x60] sm:$0xff] %v580_v39  ;;  %v566_v44 = vadd.f32 %v973_v30, %v284_v42  ;;  %v638_v45 = vadd.f32 %v808_v43, %v978_v31  ;;  %v485_v46 = vpop.f32.mrb[15].mxu1 }
 0x100   :  { %v583_v47 = vmax.f32 %v567_v41, 0.0  ;;  %v637_v48 = vadd.f32 %v978_v31, %v485_v46 }
 0x101   :  { %v582_v49 = vmax.f32 %v566_v44, 0.0  ;;  %654 = vst [vmem:[%s1113_s6 + $0x78] sm:$0xff] %v638_v45 }
 0x102   :  { %599 = vst [vmem:[%s1114_s5 + $0x78] sm:$0xff] %v583_v47  ;;  %653 = vst [vmem:[%s1113_s6 + $0x70] sm:$0xff] %v637_v48 }
 0x103   :  { %598 = vst [vmem:[%s1114_s5 + $0x70] sm:$0xff] %v582_v49 }

</bundles_post_ra>
